<compile_context>
chip_gen: v7x
topology: tpu7x:2x2x1
jax: 0.10.0
libtpu: 0.0.40
codegen_flags: <defaults>
</compile_context>

<pallas_src>
import functools

import jax
import jax.numpy as jnp
from jax.experimental import pallas as pl
from jax.experimental.pallas import tpu as pltpu


_VMEM_LIMIT = 48 * 1024 * 1024   # fits v7x (64 MiB physical); fine on v5e/v6e (128 MiB)

_HAS_BUFFERED = hasattr(pl, "Buffered")


def _round_up(x, m):
    return (x + m - 1) // m * m


def _const_spec(block_shape, index_map):
    """BlockSpec for blocks whose index is constant along the inner grid axis:
    single-buffer them to halve their VMEM footprint (safe fallback otherwise)."""
    if _HAS_BUFFERED:
        try:
            return pl.BlockSpec(block_shape, index_map, pipeline_mode=pl.Buffered(1))
        except TypeError:
            pass
    return pl.BlockSpec(block_shape, index_map)


# ----------------------------------------------------------------------------
# Generic row/column-blocked "X @ W + b" Pallas matmul.
# grid = (N_blocks, M_blocks): the weight block index is constant along the
# inner M axis, so with Buffered(1) it is fetched once per N block and stays
# VMEM-resident while all row blocks stream through.
# ----------------------------------------------------------------------------
def _matmul_bias_kernel(x_ref, w_ref, b_ref, o_ref):
    o_ref[...] = (jnp.dot(x_ref[...], w_ref[...],
                          preferred_element_type=jnp.float32)
                  + b_ref[...]).astype(o_ref.dtype)


def _matmul_bias(x, w, b, *, out_dtype=jnp.float32, row_block=256, col_block=512):
    """x: (M, K), w: (K, N), b: (N,) f32  ->  (M, N) out_dtype."""
    M, K = x.shape
    N = w.shape[1]

    rb = min(row_block, _round_up(M, 8))
    Mp = _round_up(M, rb)
    if Mp != M:
        x = jnp.pad(x, ((0, Mp - M), (0, 0)))

    if N <= col_block:
        cb, Np = N, N                       # single N block (full-dim, no pad needed)
    else:
        cb = col_block                      # multiple of 128
        Np = _round_up(N, cb)
        if Np != N:
            w = jnp.pad(w, ((0, 0), (0, Np - N)))
            b = jnp.pad(b, (0, Np - N))

    out = pl.pallas_call(
        _matmul_bias_kernel,
        out_shape=jax.ShapeDtypeStruct((Mp, Np), out_dtype),
        grid=(Np // cb, Mp // rb),          # j (cols) outer, i (rows) inner
        in_specs=[
            pl.BlockSpec((rb, K), lambda j, i: (i, 0)),
            _const_spec((K, cb), lambda j, i: (0, j)),
            _const_spec((1, cb), lambda j, i: (0, j)),
        ],
        out_specs=pl.BlockSpec((rb, cb), lambda j, i: (i, j)),
        compiler_params=pltpu.CompilerParams(
            dimension_semantics=("parallel", "parallel"),
            vmem_limit_bytes=_VMEM_LIMIT),
    )(x, w, b.reshape(1, -1))
    return out[:M, :N]


# ----------------------------------------------------------------------------
# Recurrent LSTM kernel: grid = (batch_blocks, time_blocks).
# ----------------------------------------------------------------------------
def _lstm_kernel(pre0_ref, lens_ref, h0_ref, c0_ref,
                 w_hh0_ref, w_ih_ref, w_hh_ref, b_ref,
                 top_ref, hn_ref, cn_ref,
                 h_scr, c_scr, hb_scr,
                 *, num_layers, block_t, hp):
    tb = pl.program_id(1)                         # time-block index (sequential)

    @pl.when(tb == 0)
    def _():                                      # init state for this batch block
        h_scr[...] = h0_ref[...]
        c_scr[...] = c0_ref[...]
        hb_scr[...] = h0_ref[...].astype(jnp.bfloat16)

    lens = lens_ref[...]                          # (TB, 1) int32

    def cell(gates, c_prev):
        # hp is a multiple of 128 -> gate slices are lane-tile aligned (free views)
        i_g = jax.nn.sigmoid(gates[:, 0 * hp:1 * hp])
        f_g = jax.nn.sigmoid(gates[:, 1 * hp:2 * hp])
        g_g = jnp.tanh(gates[:, 2 * hp:3 * hp])
        o_g = jax.nn.sigmoid(gates[:, 3 * hp:4 * hp])
        c_new = f_g * c_prev + i_g * g_g
        h_new = o_g * jnp.tanh(c_new)
        return h_new, c_new

    # TODO(synk): if profiles show ld/st-slot saturation or spills at large TB,
    # convert this static unroll to lax.fori_loop (state already lives in refs).
    for tt in range(block_t):
        t = tb * block_t + tt
        active = t < lens                         # (TB, 1) bool; False => frozen state

        # ---- layer 0: input projection was precomputed; only h @ W_hh here ----
        h_prev = h_scr[0]
        c_prev = c_scr[0]
        gates = pre0_ref[tt] + jnp.dot(hb_scr[0], w_hh0_ref[...],
                                       preferred_element_type=jnp.float32)
        h_new, c_new = cell(gates, c_prev)
        h_l = jnp.where(active, h_new, h_prev)
        c_l = jnp.where(active, c_new, c_prev)
        hb = h_l.astype(jnp.bfloat16)
        h_scr[0] = h_l
        c_scr[0] = c_l
        hb_scr[0] = hb
        x_bf = hb                                 # bf16 input to the next layer

        # ---- layers 1..L-1: two dots against the W_ih / W_hh stacks ----------
        for l in range(1, num_layers):
            h_prev = h_scr[l]
            c_prev = c_scr[l]
            gates = (jnp.dot(x_bf, w_ih_ref[l - 1],
                             preferred_element_type=jnp.float32)
                     + jnp.dot(hb_scr[l], w_hh_ref[l - 1],
                               preferred_element_type=jnp.float32)
                     + b_ref[l - 1])
            h_new, c_new = cell(gates, c_prev)
            h_l = jnp.where(active, h_new, h_prev)
            c_l = jnp.where(active, c_new, c_prev)
            hb = h_l.astype(jnp.bfloat16)
            h_scr[l] = h_l
            c_scr[l] = c_l
            hb_scr[l] = hb
            x_bf = hb

        # pad_packed_sequence zero-fills padded positions (their logits == bias).
        top_ref[tt] = jnp.where(active, x_bf, jnp.zeros_like(x_bf))

    # Write the final hidden/cell state only once, on the last time block.
    @pl.when(tb == pl.num_programs(1) - 1)
    def _():
        hn_ref[...] = h_scr[...]
        cn_ref[...] = c_scr[...]


# ----------------------------------------------------------------------------
# Parameter massaging helpers.
# ----------------------------------------------------------------------------
def _pad_gate_weight_t(w, hp):
    """(4H, H) PyTorch LSTM weight -> (Hp, 4Hp) transposed, zero-padded PER GATE."""
    fourh, h = w.shape
    wt = w.T.reshape(h, 4, fourh // 4)                         # (H, 4, H) [i,f,g,o]
    wt = jnp.pad(wt, ((0, hp - h), (0, 0), (0, hp - fourh // 4)))
    return wt.reshape(hp, 4 * hp)


def _pad_gate_bias(b, hp):
    fourh = b.shape[0]
    h = fourh // 4
    return jnp.pad(b.reshape(4, h), ((0, 0), (0, hp - h))).reshape(4 * hp)


# ----------------------------------------------------------------------------
# Wrapper = RecurrentNetwork.forward
# ----------------------------------------------------------------------------
def recurrent_forward(vecs, lengths, hiddens, params, *,
                      time_block=8, batch_block=None):
    """Mirrors RecurrentNetwork.forward.  vecs: int32 (B, T); lengths: (B,) or None.

    batch_block: leave None (single batch block, MXU-filling) on v5e/v6e; on a
    v7x megacore pass B//2 only when B//2 >= 256 so both TensorCores stay busy.
    """
    emb_table = params["embedding"]          # (V, H)
    w_ih = params["w_ih"]                    # (L, 4H, H)
    w_hh = params["w_hh"]                    # (L, 4H, H)
    b_ih = params["b_ih"]                    # (L, 4H)
    b_hh = params["b_hh"]                    # (L, 4H)
    w_lin = params["w_lin"]                  # (V, H)
    b_lin = params["b_lin"]                  # (V,)

    B, T = vecs.shape
    L, fourH, H = w_ih.shape
    V = w_lin.shape[0]
    Hp = _round_up(H, 128)                   # lane-aligned hidden
    fourHp = 4 * Hp

    # ---- grid tiling: batch blocks (parallel / megacore) x time blocks ------
    if batch_block is None:
        TB = B
    else:
        TB = batch_block
        if B % TB != 0 or (TB != B and TB % 8 != 0):
            TB = B                           # fall back to a single, MXU-filling block
    TT = max(1, min(time_block, T))
    Tp = _round_up(T, TT)
    nb, nt = B // TB, Tp // TT

    # ---- parameter massaging: bf16, padded, transposed, stacked, biases summed
    bsum = b_ih + b_hh
    w_ih0_t = _pad_gate_weight_t(w_ih[0], Hp).astype(jnp.bfloat16)   # (Hp, 4Hp)
    w_hh0_t = _pad_gate_weight_t(w_hh[0], Hp).astype(jnp.bfloat16)   # (Hp, 4Hp)
    b0 = _pad_gate_bias(bsum[0], Hp)                                  # folded into pre0

    Lm1 = max(L - 1, 1)
    if L > 1:
        w_ih_s = jnp.stack([_pad_gate_weight_t(w_ih[l], Hp)
                            for l in range(1, L)]).astype(jnp.bfloat16)  # (L-1,Hp,4Hp)
        w_hh_s = jnp.stack([_pad_gate_weight_t(w_hh[l], Hp)
                            for l in range(1, L)]).astype(jnp.bfloat16)  # (L-1,Hp,4Hp)
        b_s = jnp.stack([_pad_gate_bias(bsum[l], Hp)
                         for l in range(1, L)]).reshape(Lm1, 1, fourHp)
    else:                                     # dummy slabs so the signature is fixed
        w_ih_s = jnp.zeros((1, Hp, fourHp), jnp.bfloat16)
        w_hh_s = jnp.zeros((1, Hp, fourHp), jnp.bfloat16)
        b_s = jnp.zeros((1, 1, fourHp), jnp.float32)

    w_lin_t = jnp.pad(w_lin.T, ((0, Hp - H), (0, 0))).astype(jnp.bfloat16)  # (Hp, V)

    # ---- glue (XLA): embedding gather, lengths, initial state ---------------
    emb = jnp.take(emb_table, vecs, axis=0)                           # (B, T, H)
    x = jnp.pad(emb, ((0, 0), (0, 0), (0, Hp - H)))
    x = jnp.transpose(x, (1, 0, 2)).astype(jnp.bfloat16)              # (T, B, Hp)

    if lengths is None:
        lens = jnp.full((B,), T, dtype=jnp.int32)
    else:
        lens = lengths.astype(jnp.int32)
    lens_col = lens.reshape(B, 1)

    # TODO(synk): when hiddens is None, skip the h0/c0 input blocks entirely and
    # zero-init the scratch in-kernel (saves two (L,TB,Hp) DMAs per batch block).
    if hiddens is None:
        h0 = jnp.zeros((L, B, Hp), jnp.float32)
        c0 = jnp.zeros((L, B, Hp), jnp.float32)
    else:
        h0 = jnp.pad(hiddens[0].astype(jnp.float32), ((0, 0), (0, 0), (0, Hp - H)))
        c0 = jnp.pad(hiddens[1].astype(jnp.float32), ((0, 0), (0, 0), (0, Hp - H)))

    # ---- hoisted matmul #1: layer-0 input projection for ALL timesteps ------
    # Emitted in bf16: halves the HBM round trip and the double-buffered VMEM block.
    pre0 = _matmul_bias(x.reshape(T * B, Hp), w_ih0_t, b0,
                        out_dtype=jnp.bfloat16, col_block=fourHp)     # (T*B, 4Hp) bf16
    pre0 = pre0.reshape(T, B, fourHp)
    if Tp != T:
        pre0 = jnp.pad(pre0, ((0, Tp - T), (0, 0), (0, 0)))           # mask handles it

    # ---- recurrent Pallas kernel --------------------------------------------
    # TODO(synk): on v7x, if L*(Hp*4Hp)*4 bytes of stacked weights (+ pre0/top
    # blocks + scratch) exceeds ~40 MiB, split the layer stack into two
    # sequential pallas_calls and pass the intermediate h through HBM in bf16.
    kernel = functools.partial(_lstm_kernel, num_layers=L, block_t=TT, hp=Hp)
    top, hn, cn = pl.pallas_call(
        kernel,
        out_shape=(
            jax.ShapeDtypeStruct((Tp, B, Hp), jnp.bfloat16),
            jax.ShapeDtypeStruct((L, B, Hp), jnp.float32),
            jax.ShapeDtypeStruct((L, B, Hp), jnp.float32),
        ),
        grid_spec=pltpu.PrefetchScalarGridSpec(
            num_scalar_prefetch=0,
            grid=(nb, nt),
            in_specs=[
                pl.BlockSpec((TT, TB, fourHp), lambda b, t: (t, b, 0)),    # pre-gates
                pl.BlockSpec((TB, 1), lambda b, t: (b, 0)),                # lengths
                _const_spec((L, TB, Hp), lambda b, t: (0, b, 0)),          # h0
                _const_spec((L, TB, Hp), lambda b, t: (0, b, 0)),          # c0
                _const_spec((Hp, fourHp), lambda b, t: (0, 0)),            # w_hh layer0
                _const_spec((Lm1, Hp, fourHp), lambda b, t: (0, 0, 0)),    # W_ih stack
                _const_spec((Lm1, Hp, fourHp), lambda b, t: (0, 0, 0)),    # W_hh stack
                _const_spec((Lm1, 1, fourHp), lambda b, t: (0, 0, 0)),     # bias stack
            ],
            out_specs=[
                pl.BlockSpec((TT, TB, Hp), lambda b, t: (t, b, 0)),        # top hidden
                pl.BlockSpec((L, TB, Hp), lambda b, t: (0, b, 0)),         # h_n
                pl.BlockSpec((L, TB, Hp), lambda b, t: (0, b, 0)),         # c_n
            ],
            scratch_shapes=[
                pltpu.VMEM((L, TB, Hp), jnp.float32),                      # h state
                pltpu.VMEM((L, TB, Hp), jnp.float32),                      # c state
                pltpu.VMEM((L, TB, Hp), jnp.bfloat16),                     # bf16 h copy
            ],
        ),
        compiler_params=pltpu.CompilerParams(
            dimension_semantics=("parallel", "arbitrary"),
            vmem_limit_bytes=_VMEM_LIMIT),
    )(pre0, lens_col, h0, c0, w_hh0_t, w_ih_s, w_hh_s, b_s)

    # ---- hoisted matmul #2: vocab Linear over all timesteps at once ---------
    # Transpose the (T,B,Hp) bf16 hidden (cheap) BEFORE the Linear so the (B,T,V)
    # logits need no further transpose.
    top_bt = jnp.transpose(top[:T], (1, 0, 2)).reshape(B * T, Hp)      # (B*T, Hp) bf16
    logits = _matmul_bias(top_bt, w_lin_t, b_lin,
                          out_dtype=jnp.float32, col_block=512)        # (B*T, V) f32
    out = logits.reshape(B, T, V)

    return out, lengths, (hn[..., :H], cn[..., :H])


# ----------------------------------------------------------------------------
# Pure-JAX reference (PyTorch semantics). compute_dtype controls matmul-operand
# precision so we can check both kernel logic (bf16-matched) and semantic
# fidelity (f32, loose).
# ----------------------------------------------------------------------------
def reference_forward(vecs, lengths, hiddens, params, compute_dtype=jnp.float32):
    cd = compute_dtype
    emb = jnp.take(params["embedding"], vecs, axis=0).astype(jnp.float32)
    B, T, H = emb.shape
    L = params["w_ih"].shape[0]
    lens = jnp.full((B,), T, jnp.int32) if lengths is None else lengths.astype(jnp.int32)
    if hiddens is None:
        h = jnp.zeros((L, B, H), jnp.float32)
        c = jnp.zeros((L, B, H), jnp.float32)
    else:
        h, c = hiddens
    w_ih = params["w_ih"].astype(cd)
    w_hh = params["w_hh"].astype(cd)
    outs = []
    for t in range(T):
        x_t = emb[:, t, :]
        m = (t < lens)[:, None]
        layer_in = x_t
        new_h, new_c = [], []
        for l in range(L):
            gates = (jnp.dot(layer_in.astype(cd), w_ih[l].T,
                             preferred_element_type=jnp.float32)
                     + jnp.dot(h[l].astype(cd), w_hh[l].T,
                               preferred_element_type=jnp.float32)
                     + params["b_ih"][l] + params["b_hh"][l])
            i_g, f_g, g_g, o_g = jnp.split(gates, 4, axis=-1)
            i_g, f_g, o_g = jax.nn.sigmoid(i_g), jax.nn.sigmoid(f_g), jax.nn.sigmoid(o_g)
            g_g = jnp.tanh(g_g)
            c_new = f_g * c[l] + i_g * g_g
            h_new = o_g * jnp.tanh(c_new)
            h_l = jnp.where(m, h_new, h[l])
            c_l = jnp.where(m, c_new, c[l])
            new_h.append(h_l)
            new_c.append(c_l)
            layer_in = h_l
        h = jnp.stack(new_h)
        c = jnp.stack(new_c)
        outs.append(jnp.where(m, layer_in, 0.0))
    top = jnp.stack(outs, axis=1)                                      # (B, T, H)
    out = (jnp.dot(top.astype(cd), params["w_lin"].astype(cd).T,
                   preferred_element_type=jnp.float32) + params["b_lin"])
    return out, lengths, (h, c)


def init_params(key, vocab_size, hidden_size, num_layers):
    ks = jax.random.split(key, 8)
    H, V, L = hidden_size, vocab_size, num_layers
    scale = 0.1
    return {
        "embedding": scale * jax.random.normal(ks[0], (V, H), jnp.float32),
        "w_ih": scale * jax.random.normal(ks[1], (L, 4 * H, H), jnp.float32),
        "w_hh": scale * jax.random.normal(ks[2], (L, 4 * H, H), jnp.float32),
        "b_ih": scale * jax.random.normal(ks[3], (L, 4 * H), jnp.float32),
        "b_hh": scale * jax.random.normal(ks[4], (L, 4 * H), jnp.float32),
        "w_lin": scale * jax.random.normal(ks[5], (V, H), jnp.float32),
        "b_lin": scale * jax.random.normal(ks[6], (V,), jnp.float32),
    }


if __name__ == "__main__":
    vocab_size, hidden_size, num_layers = 16, 32, 2
    B, T = 16, 10

    key = jax.random.PRNGKey(0)
    pkey, vkey = jax.random.split(key)
    params = init_params(pkey, vocab_size, hidden_size, num_layers)

    vecs = jax.random.randint(vkey, (B, T), 0, vocab_size, dtype=jnp.int32)
    lengths = jnp.array([10, 10, 9, 9, 8, 8, 7, 7, 6, 6, 5, 5, 4, 3, 2, 1],
                        dtype=jnp.int32)          # sorted descending (pack_padded default)
    hiddens = None

    # Config 1: single batch block (production default), three time blocks.
    out, lens_out, (hn, cn) = recurrent_forward(
        vecs, lengths, hiddens, params, time_block=4, batch_block=None)
    jax.block_until_ready((out, hn, cn))

    assert out.shape == (B, T, vocab_size)
    assert hn.shape == (num_layers, B, hidden_size)
    assert cn.shape == (num_layers, B, hidden_size)

    # Check vs a reference using the same bf16 matmul operands (kernel logic);
    # tolerance allows the extra bf16 rounding of the stored pre0 / top tensors.
    ref_out, _, (ref_hn, ref_cn) = reference_forward(
        vecs, lengths, hiddens, params, compute_dtype=jnp.bfloat16)
    assert jnp.allclose(out, ref_out, atol=2e-2), "logits mismatch (bf16 reference)"
    assert jnp.allclose(hn, ref_hn, atol=2e-2), "h_n mismatch (bf16 reference)"
    assert jnp.allclose(cn, ref_cn, atol=2e-2), "c_n mismatch (bf16 reference)"

    # Loose check vs the full-f32 reference (bf16 MXU compute drift stays small).
    f32_out, _, (f32_hn, f32_cn) = reference_forward(
        vecs, lengths, hiddens, params, compute_dtype=jnp.float32)
    assert jnp.allclose(out, f32_out, atol=5e-2), "logits drift vs f32 reference"
    assert jnp.allclose(hn, f32_hn, atol=5e-2), "h_n drift vs f32 reference"

    # Config 2: no lengths (no packing) + provided initial hiddens + two batch
    # blocks (path coverage only -- for real workloads keep nb=1, or nb=2 on a
    # v7x megacore when B/2 >= 256), different time block.
    h_init = 0.1 * jax.random.normal(jax.random.PRNGKey(1),
                                     (num_layers, B, hidden_size), jnp.float32)
    c_init = 0.1 * jax.random.normal(jax.random.PRNGKey(2),
                                     (num_layers, B, hidden_size), jnp.float32)
    out2, _, (hn2, cn2) = recurrent_forward(
        vecs, None, (h_init, c_init), params, time_block=8, batch_block=8)
    ref2_out, _, (ref2_hn, ref2_cn) = reference_forward(
        vecs, None, (h_init, c_init), params, compute_dtype=jnp.bfloat16)
    assert jnp.allclose(out2, ref2_out, atol=2e-2), "logits mismatch (no-length path)"
    assert jnp.allclose(hn2, ref2_hn, atol=2e-2), "h_n mismatch (no-length path)"
    assert jnp.allclose(cn2, ref2_cn, atol=2e-2), "c_n mismatch (no-length path)"

    # TODO(synk): sample() (autoregressive Categorical sampling loop) is a host-side
    # loop around forward() and is not implemented as a kernel.
    print("KERNEL_OK")
</pallas_src>

<mosaic_0001>
module attributes {stable_mosaic.version = 11 : i64} {
  func.func @_matmul_bias_kernel(%arg0: i32, %arg1: i32, %arg2: memref<160x128xbf16, #tpu.memory_space<vmem>>, %arg3: memref<128x512xbf16, #tpu.memory_space<vmem>>, %arg4: memref<1x512xf32, #tpu.memory_space<vmem>>, %arg5: memref<160x512xbf16, #tpu.memory_space<vmem>>) attributes {dimension_semantics = [#tpu.dimension_semantics<parallel>, #tpu.dimension_semantics<parallel>], iteration_bounds = array<i64: 1, 1>, scalar_prefetch = 0 : i64, scratch_operands = 0 : i64, tpu.core_type = #tpu.core_type<tc>, window_params = [{transform_indices = @transform_0, window_bounds = array<i64: 160, 128>}, {pipeline_mode = #tpu.pipeline_mode<synchronous>, transform_indices = @transform_1, window_bounds = array<i64: 128, 512>}, {pipeline_mode = #tpu.pipeline_mode<synchronous>, transform_indices = @transform_2, window_bounds = array<i64: 1, 512>}, {transform_indices = @transform_3, window_bounds = array<i64: 160, 512>}]} {
    %c0 = arith.constant 0 : index
    %c0_0 = arith.constant 0 : index
    %0 = vector.load %arg2[%c0, %c0_0] : memref<160x128xbf16, #tpu.memory_space<vmem>>, vector<160x128xbf16>
    %c0_1 = arith.constant 0 : index
    %c0_2 = arith.constant 0 : index
    %1 = vector.load %arg3[%c0_1, %c0_2] : memref<128x512xbf16, #tpu.memory_space<vmem>>, vector<128x512xbf16>
    %cst = arith.constant dense<0.000000e+00> : vector<160x512xf32>
    %2 = tpu.matmul %0, %1, %cst {dimension_numbers = #tpu.dot_dimension_numbers<[1], [0], [0], [1], [0, 0, 1, 1], [], []>} : vector<160x128xbf16>, vector<128x512xbf16>, vector<160x512xf32> -> vector<160x512xf32>
    %c0_3 = arith.constant 0 : index
    %c0_4 = arith.constant 0 : index
    %3 = vector.load %arg4[%c0_3, %c0_4] : memref<1x512xf32, #tpu.memory_space<vmem>>, vector<1x512xf32>
    %4 = vector.broadcast %3 : vector<1x512xf32> to vector<160x512xf32>
    %5 = arith.addf %2, %4 : vector<160x512xf32>
    %6 = arith.truncf %5 : vector<160x512xf32> to vector<160x512xbf16>
    %c0_5 = arith.constant 0 : index
    %c0_6 = arith.constant 0 : index
    %7 = vector.load %arg5[%c0_5, %c0_6] : memref<160x512xbf16, #tpu.memory_space<vmem>>, vector<160x512xbf16>
    tpu.vector_store %arg5[%c0_5, %c0_6], %6 {strides = array<i32>} : memref<160x512xbf16, #tpu.memory_space<vmem>>, vector<160x512xbf16>,
    return
  }
  func.func @transform_0(%arg0: i32, %arg1: i32) -> (i32, i32) {
    %c0_i32 = arith.constant 0 : i32
    %c0_i32_0 = arith.constant 0 : i32
    return %arg1, %c0_i32 : i32, i32
  }
  func.func @transform_1(%arg0: i32, %arg1: i32) -> (i32, i32) {
    %c0_i32 = arith.constant 0 : i32
    %c0_i32_0 = arith.constant 0 : i32
    return %c0_i32, %arg0 : i32, i32
  }
  func.func @transform_2(%arg0: i32, %arg1: i32) -> (i32, i32) {
    %c0_i32 = arith.constant 0 : i32
    %c0_i32_0 = arith.constant 0 : i32
    return %c0_i32, %arg0 : i32, i32
  }
  func.func @transform_3(%arg0: i32, %arg1: i32) -> (i32, i32) {
    %c0_i32 = arith.constant 0 : i32
    return %arg1, %arg0 : i32, i32
  }
}

</mosaic_0001>

<bundles_post_ra>
// kernel: tpu_custom_call.1
= control target key start
LH: loop header
LB: loop body
LE: loop exit
PB: predicated region body
PF: predicated region fallthrough
CT: control target
= control target key end

     0   :  { %8 = vsyncpa [#allocation3], 0  ;;  %s1343_s0 = inlined_call_operand.hbm [shape: bf16[160,128], index: 0, kind: input, shape index: {}]   ;;  %s1344_s1 = inlined_call_operand.hbm [shape: bf16[128,512], index: 1, kind: input, shape index: {}]   ;;  %s1345_s2 = inlined_call_operand.vmem [shape: f32[1,512], index: 2, kind: input, shape index: {}]   ;;  %s1346_s3 = inlined_call_operand.hbm [shape: bf16[160,512], index: 3, kind: output, shape index: {}]  }
   0x1   :  { %9 = vsyncpa [#allocation6], 0 }
   0x2   :  { %10 = vsyncpa [#allocation4], 0  ;;  %s1162_s12 = smov [#allocation2]   ;;  %s1090_s16 = scalar_lea.hbm %s1343_s0, 1280 }
   0x3   :  { %s16_s13 = sshll.u32 %s1162_s12, 4  ;;  %p1091_p0 = scmp.ne.s32.totalorder %s1343_s0, %s1090_s16  ;;  %s17_s13 = int_to_ptr.vmem [resolvable:$true] %s16_s13 }
   0x4   :  { %p1094_p1 = scmp.lt.u32.totalorder %s1090_s16, %s1343_s0 }
   0x6   :  { %p1096_p2 = pnand %p1094_p1, %p1091_p0 }
   0x8   :  { %1099 = shalt.err (!%p1096_p2)
}
   0x9   :  { %s1100_s21 = scalar_lea.vmem %s17_s13, 1280  ;;  %p1105_p4 = scmp.lt.s32.totalorder %s17_s13, %s17_s13 }
   0xa   :  { %p1101_p3 = scmp.ne.s32.totalorder %s17_s13, %s1100_s21  ;;  %p1106_p5 = scmp.lt.s32.totalorder %s1100_s21, %s1100_s21 }
   0xc   :  { %p1107_p6 = por %p1106_p5, %p1105_p4 }
   0xe   :  { %p1108_p7 = pnand %p1107_p6, %p1101_p3 }
  0x10   :  { %1111 = shalt.err (!%p1108_p7)
}
  0x11   :  { %s1163_s22 = smov 64   ;;  %s1164_s23 = smov 4  }
  0x12   :  { %22 = dma.hbm_to_vmem [thread:$0]  %s1343_s0, 1280, %s17_s13, [#allocation3], %s1163_s22, %s1163_s22, %s1164_s23  }
  0x13   :  { %s1165_s26 = smov [#allocation5]   ;;  %s1112_s30 = scalar_lea.hbm %s1344_s1, 4096 }
  0x14   :  { %s28_s27 = sshll.u32 %s1165_s26, 4  ;;  %p1113_p8 = scmp.ne.s32.totalorder %s1344_s1, %s1112_s30  ;;  %s29_s27 = int_to_ptr.vmem [resolvable:$true] %s28_s27 }
  0x15   :  { %p1116_p9 = scmp.lt.u32.totalorder %s1112_s30, %s1344_s1 }
  0x17   :  { %p1118_p10 = pnand %p1116_p9, %p1113_p8 }
  0x19   :  { %1121 = shalt.err (!%p1118_p10)
}
  0x1a   :  { %s1122_s8 = scalar_lea.vmem %s29_s27, 4096  ;;  %p1127_p12 = scmp.lt.s32.totalorder %s29_s27, %s29_s27 }
  0x1b   :  { %p1123_p11 = scmp.ne.s32.totalorder %s29_s27, %s1122_s8  ;;  %p1128_p13 = scmp.lt.s32.totalorder %s1122_s8, %s1122_s8 }
  0x1d   :  { %p1129_p0 = por %p1128_p13, %p1127_p12 }
  0x1f   :  { %p1130_p1 = pnand %p1129_p0, %p1123_p11 }
  0x21   :  { %1133 = shalt.err (!%p1130_p1)
}
  0x22   :  { %s1166_s0 = smov 256   ;;  %s1167_s9 = smov 16  }
  0x23   :  { %34 = dma.hbm_to_vmem [thread:$0]  %s1344_s1, 4096, %s29_s27, [#allocation6], %s1166_s0, %s1166_s0, %s1167_s9  }
  0x24   :  { %1156 = dma.done.wait [#allocation3], 1280  }
  0x25   :  { %1157 = vsyncadd [#allocation3], 4294966016 }
  0x26   :  { %1158 = dma.done.wait [#allocation6], 4096  }
  0x27   :  { %1159 = vsyncadd [#allocation6], 4294963200  ;;  %v1168_v0 = vmov 0   ;;  %v1032_v1 = vld [vmem:[#allocation5 + $0x4] ss:$16 sps:$4 sm:$0xff]   ;;  %v1081_v34 = vld [vmem:[#allocation2 + $0x8] sm:$0xff]   ;;  %v98_v43 = vlaneseq }
  0x28   :  { %370 = vmatprep.mubr.bf16.mxu0 %v1168_v0  ;;  %503 = vmatprep.mubr.bf16.mxu1 %v1168_v0  ;;  %v1034_v2 = vld [vmem:[#allocation5 + $0xc] ss:$16 sps:$4 sm:$0xff]   ;;  %v1036_v3 = vld [vmem:[#allocation5] ss:$16 sps:$4 sm:$0xff]   ;;  %v1037_v4 = vld [vmem:[#allocation5 + $0x8] ss:$16 sps:$4 sm:$0xff]  }
  0x29   :  { %338 = vmatprep.subr.bf16.mxu0 %v1032_v1  ;;  %471 = vmatprep.subr.bf16.mxu1 %v1034_v2  ;;  %v1038_v5 = vld [vmem:[#allocation5 + $0x24] ss:$16 sps:$4 sm:$0xff]   ;;  %v1040_v6 = vld [vmem:[#allocation5 + $0x2c] ss:$16 sps:$4 sm:$0xff]   ;;  %v1042_v7 = vld [vmem:[#allocation5 + $0x20] ss:$16 sps:$4 sm:$0xff]  }
  0x2a   :  { %339 = vmatpush1.bf16.msra.mxu0 %v1036_v3  ;;  %472 = vmatpush1.bf16.msra.mxu1 %v1037_v4  ;;  %v1043_v8 = vld [vmem:[#allocation5 + $0x28] ss:$16 sps:$4 sm:$0xff]   ;;  %v1044_v9 = vld [vmem:[#allocation5 + $0x44] ss:$16 sps:$4 sm:$0xff]   ;;  %v1046_v10 = vld [vmem:[#allocation5 + $0x4c] ss:$16 sps:$4 sm:$0xff]  }
  0x2b   :  { %340 = vmatprep.subr.bf16.mxu0 %v1038_v5  ;;  %473 = vmatprep.subr.bf16.mxu1 %v1040_v6  ;;  %v1048_v11 = vld [vmem:[#allocation5 + $0x40] ss:$16 sps:$4 sm:$0xff]   ;;  %v1049_v12 = vld [vmem:[#allocation5 + $0x48] ss:$16 sps:$4 sm:$0xff]   ;;  %v1050_v13 = vld [vmem:[#allocation5 + $0x64] ss:$16 sps:$4 sm:$0xff]  }
  0x2c   :  { %v1052_v14 = vld [vmem:[#allocation5 + $0x6c] ss:$16 sps:$4 sm:$0xff]   ;;  %v1054_v15 = vld [vmem:[#allocation5 + $0x60] ss:$16 sps:$4 sm:$0xff]   ;;  %v1055_v16 = vld [vmem:[#allocation5 + $0x68] ss:$16 sps:$4 sm:$0xff]  }
  0x2d   :  { %v1056_v17 = vld [vmem:[#allocation5 + $0x84] ss:$16 sps:$4 sm:$0xff]   ;;  %v1058_v18 = vld [vmem:[#allocation5 + $0x8c] ss:$16 sps:$4 sm:$0xff]   ;;  %v1060_v19 = vld [vmem:[#allocation5 + $0x80] ss:$16 sps:$4 sm:$0xff]  }
  0x2e   :  { %341 = vmatpush1.bf16.msra.mxu0 %v1042_v7  ;;  %474 = vmatpush1.bf16.msra.mxu1 %v1043_v8  ;;  %v1061_v20 = vld [vmem:[#allocation5 + $0x88] ss:$16 sps:$4 sm:$0xff]   ;;  %v1062_v21 = vld [vmem:[#allocation5 + $0xa4] ss:$16 sps:$4 sm:$0xff]   ;;  %v1064_v22 = vld [vmem:[#allocation5 + $0xac] ss:$16 sps:$4 sm:$0xff]  }
  0x2f   :  { %342 = vmatprep.subr.bf16.mxu0 %v1044_v9  ;;  %475 = vmatprep.subr.bf16.mxu1 %v1046_v10  ;;  %v1066_v23 = vld [vmem:[#allocation5 + $0xa0] ss:$16 sps:$4 sm:$0xff]   ;;  %v1067_v24 = vld [vmem:[#allocation5 + $0xa8] ss:$16 sps:$4 sm:$0xff]   ;;  %v1068_v25 = vld [vmem:[#allocation5 + $0xc4] ss:$16 sps:$4 sm:$0xff]  }
  0x30   :  { %v1070_v26 = vld [vmem:[#allocation5 + $0xcc] ss:$16 sps:$4 sm:$0xff]   ;;  %v1072_v27 = vld [vmem:[#allocation5 + $0xc0] ss:$16 sps:$4 sm:$0xff]   ;;  %v1073_v28 = vld [vmem:[#allocation5 + $0xc8] ss:$16 sps:$4 sm:$0xff]  }
  0x31   :  { %v1074_v29 = vld [vmem:[#allocation5 + $0xe4] ss:$16 sps:$4 sm:$0xff]   ;;  %v1076_v30 = vld [vmem:[#allocation5 + $0xec] ss:$16 sps:$4 sm:$0xff]   ;;  %v1078_v31 = vld [vmem:[#allocation5 + $0xe0] ss:$16 sps:$4 sm:$0xff]  }
  0x32   :  { %343 = vmatpush1.bf16.msra.mxu0 %v1048_v11  ;;  %476 = vmatpush1.bf16.msra.mxu1 %v1049_v12  ;;  %v1079_v32 = vld [vmem:[#allocation5 + $0xe8] ss:$16 sps:$4 sm:$0xff]   ;;  %v1080_v33 = vld [vmem:[#allocation2] sm:$0xff]   ;;  %v1082_v35 = vld [vmem:[#allocation2 + $0x10] sm:$0xff]   ;;  %v99_v44 = vshrl.u32 %v98_v43, 7 }
  0x33   :  { %344 = vmatprep.subr.bf16.mxu0 %v1050_v13  ;;  %477 = vmatprep.subr.bf16.mxu1 %v1052_v14  ;;  %v1083_v36 = vld [vmem:[#allocation2 + $0x18] sm:$0xff]   ;;  %v1084_v37 = vld [vmem:[#allocation2 + $0x20] sm:$0xff]   ;;  %v1085_v38 = vld [vmem:[#allocation2 + $0x28] sm:$0xff]  }
  0x34   :  { %v1086_v39 = vld [vmem:[#allocation2 + $0x30] sm:$0xff]   ;;  %v1087_v40 = vld [vmem:[#allocation2 + $0x38] sm:$0xff]   ;;  %v1088_v41 = vld [vmem:[#allocation2 + $0x40] sm:$0xff]   ;;  %v100_v45 = vsub.s32 0, %v99_v44  ;;  %v108_v46 = vsub.s32 2, %v99_v44  ;;  %v104_v48 = vsub.s32 1, %v99_v44 }
  0x35   :  { %v1089_v42 = vld [vmem:[#allocation2 + $0x48] sm:$0xff]   ;;  %v96_v47 = vld [vmem:[%s1345_s2] sm:$0xf]  ;;  %v112_v49 = vsub.s32 3, %v99_v44  ;;  %s1169_s2 = smov [#allocation7]  }
  0x36   :  { %345 = vmatpush1.bf16.msra.mxu0 %v1054_v15  ;;  %478 = vmatpush1.bf16.msra.mxu1 %v1055_v16  ;;  %v1240_v50 = vrot.slane %v96_v47, %v100_v45  ;;  %v1242_v51 = vrot.slane %v96_v47, %v108_v46  ;;  %v1244_v52 = vrot.slane %v96_v47, %v104_v48  ;;  %s889_s13 = sshll.u32 %s1169_s2, 4  ;;  %s890_s13 = int_to_ptr.vmem [resolvable:$true] %s889_s13 }
  0x37   :  { %346 = vmatprep.subr.bf16.mxu0 %v1056_v17  ;;  %479 = vmatprep.subr.bf16.mxu1 %v1058_v18  ;;  %v1246_v53 = vrot.slane %v96_v47, %v112_v49  ;;  %s1134_s14 = scalar_lea.vmem %s890_s13, 5120  ;;  %p1139_p3 = scmp.lt.s32.totalorder %s890_s13, %s890_s13 }
  0x38   :  { %p1135_p2 = scmp.ne.s32.totalorder %s890_s13, %s1134_s14  ;;  %p1140_p4 = scmp.lt.s32.totalorder %s1134_s14, %s1134_s14 }
  0x3a   :  { %347 = vmatpush1.bf16.msra.mxu0 %v1060_v19  ;;  %480 = vmatpush1.bf16.msra.mxu1 %v1061_v20  ;;  %p1141_p5 = por %p1140_p4, %p1139_p3 }
  0x3b   :  { %348 = vmatprep.subr.bf16.mxu0 %v1062_v21  ;;  %481 = vmatprep.subr.bf16.mxu1 %v1064_v22 }
  0x3c   :  { %p1142_p6 = pnand %p1141_p5, %p1135_p2 }
  0x3e   :  { %349 = vmatpush1.bf16.msra.mxu0 %v1066_v23  ;;  %482 = vmatpush1.bf16.msra.mxu1 %v1067_v24 }
  0x3f   :  { %350 = vmatprep.subr.bf16.mxu0 %v1068_v25  ;;  %483 = vmatprep.subr.bf16.mxu1 %v1070_v26 }
  0x42   :  { %351 = vmatpush1.bf16.msra.mxu0 %v1072_v27  ;;  %484 = vmatpush1.bf16.msra.mxu1 %v1073_v28 }
  0x43   :  { %352 = vmatprep.subr.bf16.mxu0 %v1074_v29  ;;  %485 = vmatprep.subr.bf16.mxu1 %v1076_v30 }
  0x46   :  { %353 = vmatpush1.bf16.msra.mxu0 %v1078_v31  ;;  %486 = vmatpush1.bf16.msra.mxu1 %v1079_v32 }
  0x49   :  { %371 = vmatmul.mubr.bf16.vlgmr.msra.gmra.mrb[0].mxu0 %v1080_v33  ;;  %504 = vmatmul.mubr.bf16.vlgmr.msra.gmra.mrb[0].mxu1 %v1080_v33 }
  0x4a   :  { %380 = vmatprep.mubr.bf16.mxu0 %v1168_v0  ;;  %513 = vmatprep.mubr.bf16.mxu1 %v1168_v0 }
  0x51   :  { %381 = vmatmul.mubr.bf16.gmra.mrb[4].mxu0 %v1081_v34  ;;  %514 = vmatmul.mubr.bf16.gmra.mrb[4].mxu1 %v1081_v34 }
  0x52   :  { %390 = vmatprep.mubr.bf16.mxu0 %v1168_v0  ;;  %523 = vmatprep.mubr.bf16.mxu1 %v1168_v0 }
  0x59   :  { %391 = vmatmul.mubr.bf16.gmra.mrb[8].mxu0 %v1082_v35  ;;  %524 = vmatmul.mubr.bf16.gmra.mrb[8].mxu1 %v1082_v35 }
  0x5a   :  { %400 = vmatprep.mubr.bf16.mxu0 %v1168_v0  ;;  %533 = vmatprep.mubr.bf16.mxu1 %v1168_v0 }
  0x61   :  { %401 = vmatmul.mubr.bf16.gmra.mrb[12].mxu0 %v1083_v36  ;;  %534 = vmatmul.mubr.bf16.gmra.mrb[12].mxu1 %v1083_v36 }
  0x62   :  { %410 = vmatprep.mubr.bf16.mxu0 %v1168_v0  ;;  %543 = vmatprep.mubr.bf16.mxu1 %v1168_v0 }
  0x69   :  { %411 = vmatmul.mubr.bf16.gmra.mrb[16].mxu0 %v1084_v37  ;;  %544 = vmatmul.mubr.bf16.gmra.mrb[16].mxu1 %v1084_v37 }
  0x6a   :  { %420 = vmatprep.mubr.bf16.mxu0 %v1168_v0  ;;  %553 = vmatprep.mubr.bf16.mxu1 %v1168_v0 }
  0x71   :  { %421 = vmatmul.mubr.bf16.gmra.mrb[20].mxu0 %v1085_v38  ;;  %554 = vmatmul.mubr.bf16.gmra.mrb[20].mxu1 %v1085_v38 }
  0x72   :  { %430 = vmatprep.mubr.bf16.mxu0 %v1168_v0  ;;  %563 = vmatprep.mubr.bf16.mxu1 %v1168_v0 }
  0x79   :  { %431 = vmatmul.mubr.bf16.gmra.mrb[24].mxu0 %v1086_v39  ;;  %564 = vmatmul.mubr.bf16.gmra.mrb[24].mxu1 %v1086_v39 }
  0x7a   :  { %440 = vmatprep.mubr.bf16.mxu0 %v1168_v0  ;;  %573 = vmatprep.mubr.bf16.mxu1 %v1168_v0 }
  0x81   :  { %441 = vmatmul.mubr.bf16.gmra.mrb[28].mxu0 %v1087_v40  ;;  %574 = vmatmul.mubr.bf16.gmra.mrb[28].mxu1 %v1087_v40 }
  0x82   :  { %450 = vmatprep.mubr.bf16.mxu0 %v1168_v0  ;;  %583 = vmatprep.mubr.bf16.mxu1 %v1168_v0 }
  0x89   :  { %451 = vmatmul.mubr.bf16.gmra.mrb[32].mxu0 %v1088_v41  ;;  %584 = vmatmul.mubr.bf16.gmra.mrb[32].mxu1 %v1088_v41 }
  0x8a   :  { %460 = vmatprep.mubr.bf16.mxu0 %v1168_v0  ;;  %593 = vmatprep.mubr.bf16.mxu1 %v1168_v0 }
  0x91   :  { %461 = vmatmul.mubr.bf16.gmra.mrb[36].mxu0 %v1089_v42  ;;  %594 = vmatmul.mubr.bf16.gmra.mrb[36].mxu1 %v1089_v42 }
 0x11c   :  { %v372_v54 = vpop.f32.mrb[0].mxu0  ;;  %v505_v55 = vpop.f32.mrb[0].mxu1 }
 0x11d   :  { %v373_v56 = vadd.f32 %v372_v54, %v1240_v50  ;;  %v506_v57 = vadd.f32 %v505_v55, %v1242_v51  ;;  %v374_v58 = vpop.f32.mrb[1].mxu0  ;;  %v507_v59 = vpop.f32.mrb[1].mxu1 }
 0x11e   :  { %v375_v60 = vadd.f32 %v374_v58, %v1244_v52  ;;  %v508_v61 = vadd.f32 %v507_v59, %v1246_v53  ;;  %v376_v62 = vpop.f32.mrb[2].mxu0  ;;  %v509_v63 = vpop.f32.mrb[2].mxu1 }
 0x11f   :  { %v377_v0 = vadd.f32 %v376_v62, %v1240_v50  ;;  %v510_v1 = vadd.f32 %v509_v63, %v1242_v51  ;;  %v378_v2 = vpop.f32.mrb[3].mxu0  ;;  %v511_v3 = vpop.f32.mrb[3].mxu1 }
 0x120   :  { %v984_v4 = vpack.c.bf16 %v375_v60, %v373_v56  ;;  %v985_v5 = vpack.c.bf16 %v508_v61, %v506_v57  ;;  %v379_v6 = vadd.f32 %v378_v2, %v1244_v52  ;;  %v512_v7 = vadd.f32 %v511_v3, %v1246_v53 }
 0x122   :  { %844 = vst [vmem:[#allocation7] sm:$0xff] %v984_v4  ;;  %845 = vst [vmem:[#allocation7 + $0x8] sm:$0xff] %v985_v5  ;;  %v986_v8 = vpack.c.bf16 %v379_v6, %v377_v0  ;;  %v987_v9 = vpack.c.bf16 %v512_v7, %v510_v1 }
 0x124   :  { %846 = vst [vmem:[#allocation7 + $0x10] sm:$0xff] %v986_v8  ;;  %847 = vst [vmem:[#allocation7 + $0x18] sm:$0xff] %v987_v9  ;;  %v382_v10 = vpop.f32.mrb[4].mxu0  ;;  %v515_v11 = vpop.f32.mrb[4].mxu1 }
 0x125   :  { %v383_v12 = vadd.f32 %v382_v10, %v1240_v50  ;;  %v516_v13 = vadd.f32 %v515_v11, %v1242_v51  ;;  %v384_v14 = vpop.f32.mrb[5].mxu0  ;;  %v517_v15 = vpop.f32.mrb[5].mxu1 }
 0x126   :  { %v385_v16 = vadd.f32 %v384_v14, %v1244_v52  ;;  %v518_v17 = vadd.f32 %v517_v15, %v1246_v53  ;;  %v386_v18 = vpop.f32.mrb[6].mxu0  ;;  %v519_v19 = vpop.f32.mrb[6].mxu1 }
 0x127   :  { %v387_v20 = vadd.f32 %v386_v18, %v1240_v50  ;;  %v520_v21 = vadd.f32 %v519_v19, %v1242_v51  ;;  %v388_v22 = vpop.f32.mrb[7].mxu0  ;;  %v521_v23 = vpop.f32.mrb[7].mxu1 }
 0x128   :  { %v988_v24 = vpack.c.bf16 %v385_v16, %v383_v12  ;;  %v989_v25 = vpack.c.bf16 %v518_v17, %v516_v13  ;;  %v389_v26 = vadd.f32 %v388_v22, %v1244_v52  ;;  %v522_v27 = vadd.f32 %v521_v23, %v1246_v53 }
 0x12a   :  { %848 = vst [vmem:[#allocation7 + $0x20] sm:$0xff] %v988_v24  ;;  %849 = vst [vmem:[#allocation7 + $0x28] sm:$0xff] %v989_v25  ;;  %v990_v28 = vpack.c.bf16 %v389_v26, %v387_v20  ;;  %v991_v29 = vpack.c.bf16 %v522_v27, %v520_v21 }
 0x12c   :  { %850 = vst [vmem:[#allocation7 + $0x30] sm:$0xff] %v990_v28  ;;  %851 = vst [vmem:[#allocation7 + $0x38] sm:$0xff] %v991_v29  ;;  %v392_v30 = vpop.f32.mrb[8].mxu0  ;;  %v525_v31 = vpop.f32.mrb[8].mxu1 }
 0x12d   :  { %v393_v32 = vadd.f32 %v392_v30, %v1240_v50  ;;  %v526_v33 = vadd.f32 %v525_v31, %v1242_v51  ;;  %v394_v34 = vpop.f32.mrb[9].mxu0  ;;  %v527_v35 = vpop.f32.mrb[9].mxu1 }
 0x12e   :  { %v395_v36 = vadd.f32 %v394_v34, %v1244_v52  ;;  %v528_v37 = vadd.f32 %v527_v35, %v1246_v53  ;;  %v396_v38 = vpop.f32.mrb[10].mxu0  ;;  %v529_v39 = vpop.f32.mrb[10].mxu1 }
 0x12f   :  { %v397_v40 = vadd.f32 %v396_v38, %v1240_v50  ;;  %v530_v41 = vadd.f32 %v529_v39, %v1242_v51  ;;  %v398_v42 = vpop.f32.mrb[11].mxu0  ;;  %v531_v43 = vpop.f32.mrb[11].mxu1 }
 0x130   :  { %v992_v44 = vpack.c.bf16 %v395_v36, %v393_v32  ;;  %v993_v45 = vpack.c.bf16 %v528_v37, %v526_v33  ;;  %v399_v46 = vadd.f32 %v398_v42, %v1244_v52  ;;  %v532_v47 = vadd.f32 %v531_v43, %v1246_v53 }
 0x132   :  { %852 = vst [vmem:[#allocation7 + $0x40] sm:$0xff] %v992_v44  ;;  %853 = vst [vmem:[#allocation7 + $0x48] sm:$0xff] %v993_v45  ;;  %v994_v48 = vpack.c.bf16 %v399_v46, %v397_v40  ;;  %v995_v49 = vpack.c.bf16 %v532_v47, %v530_v41 }
 0x134   :  { %854 = vst [vmem:[#allocation7 + $0x50] sm:$0xff] %v994_v48  ;;  %855 = vst [vmem:[#allocation7 + $0x58] sm:$0xff] %v995_v49  ;;  %v402_v54 = vpop.f32.mrb[12].mxu0  ;;  %v535_v55 = vpop.f32.mrb[12].mxu1 }
 0x135   :  { %v403_v56 = vadd.f32 %v402_v54, %v1240_v50  ;;  %v536_v57 = vadd.f32 %v535_v55, %v1242_v51  ;;  %v404_v58 = vpop.f32.mrb[13].mxu0  ;;  %v537_v59 = vpop.f32.mrb[13].mxu1 }
 0x136   :  { %v405_v60 = vadd.f32 %v404_v58, %v1244_v52  ;;  %v538_v61 = vadd.f32 %v537_v59, %v1246_v53  ;;  %v406_v62 = vpop.f32.mrb[14].mxu0  ;;  %v539_v63 = vpop.f32.mrb[14].mxu1 }
 0x137   :  { %v407_v0 = vadd.f32 %v406_v62, %v1240_v50  ;;  %v540_v1 = vadd.f32 %v539_v63, %v1242_v51  ;;  %v408_v2 = vpop.f32.mrb[15].mxu0  ;;  %v541_v3 = vpop.f32.mrb[15].mxu1 }
 0x138   :  { %v996_v4 = vpack.c.bf16 %v405_v60, %v403_v56  ;;  %v997_v5 = vpack.c.bf16 %v538_v61, %v536_v57  ;;  %v409_v6 = vadd.f32 %v408_v2, %v1244_v52  ;;  %v542_v7 = vadd.f32 %v541_v3, %v1246_v53 }
 0x13a   :  { %856 = vst [vmem:[#allocation7 + $0x60] sm:$0xff] %v996_v4  ;;  %857 = vst [vmem:[#allocation7 + $0x68] sm:$0xff] %v997_v5  ;;  %v998_v8 = vpack.c.bf16 %v409_v6, %v407_v0  ;;  %v999_v9 = vpack.c.bf16 %v542_v7, %v540_v1 }
 0x13c   :  { %858 = vst [vmem:[#allocation7 + $0x70] sm:$0xff] %v998_v8  ;;  %859 = vst [vmem:[#allocation7 + $0x78] sm:$0xff] %v999_v9  ;;  %v412_v10 = vpop.f32.mrb[16].mxu0  ;;  %v545_v11 = vpop.f32.mrb[16].mxu1 }
 0x13d   :  { %v413_v12 = vadd.f32 %v412_v10, %v1240_v50  ;;  %v546_v13 = vadd.f32 %v545_v11, %v1242_v51  ;;  %v414_v14 = vpop.f32.mrb[17].mxu0  ;;  %v547_v15 = vpop.f32.mrb[17].mxu1 }
 0x13e   :  { %v415_v16 = vadd.f32 %v414_v14, %v1244_v52  ;;  %v548_v17 = vadd.f32 %v547_v15, %v1246_v53  ;;  %v416_v18 = vpop.f32.mrb[18].mxu0  ;;  %v549_v19 = vpop.f32.mrb[18].mxu1 }
 0x13f   :  { %v417_v20 = vadd.f32 %v416_v18, %v1240_v50  ;;  %v550_v21 = vadd.f32 %v549_v19, %v1242_v51  ;;  %v418_v22 = vpop.f32.mrb[19].mxu0  ;;  %v551_v23 = vpop.f32.mrb[19].mxu1 }
 0x140   :  { %v1000_v24 = vpack.c.bf16 %v415_v16, %v413_v12  ;;  %v1001_v25 = vpack.c.bf16 %v548_v17, %v546_v13  ;;  %v419_v26 = vadd.f32 %v418_v22, %v1244_v52  ;;  %v552_v27 = vadd.f32 %v551_v23, %v1246_v53 }
 0x142   :  { %860 = vst [vmem:[#allocation7 + $0x80] sm:$0xff] %v1000_v24  ;;  %861 = vst [vmem:[#allocation7 + $0x88] sm:$0xff] %v1001_v25  ;;  %v1002_v28 = vpack.c.bf16 %v419_v26, %v417_v20  ;;  %v1003_v29 = vpack.c.bf16 %v552_v27, %v550_v21 }
 0x144   :  { %862 = vst [vmem:[#allocation7 + $0x90] sm:$0xff] %v1002_v28  ;;  %863 = vst [vmem:[#allocation7 + $0x98] sm:$0xff] %v1003_v29  ;;  %v422_v30 = vpop.f32.mrb[20].mxu0  ;;  %v555_v31 = vpop.f32.mrb[20].mxu1 }
 0x145   :  { %v423_v32 = vadd.f32 %v422_v30, %v1240_v50  ;;  %v556_v33 = vadd.f32 %v555_v31, %v1242_v51  ;;  %v424_v34 = vpop.f32.mrb[21].mxu0  ;;  %v557_v35 = vpop.f32.mrb[21].mxu1 }
 0x146   :  { %v425_v36 = vadd.f32 %v424_v34, %v1244_v52  ;;  %v558_v37 = vadd.f32 %v557_v35, %v1246_v53  ;;  %v426_v38 = vpop.f32.mrb[22].mxu0  ;;  %v559_v39 = vpop.f32.mrb[22].mxu1 }
 0x147   :  { %v427_v40 = vadd.f32 %v426_v38, %v1240_v50  ;;  %v560_v41 = vadd.f32 %v559_v39, %v1242_v51  ;;  %v428_v42 = vpop.f32.mrb[23].mxu0  ;;  %v561_v43 = vpop.f32.mrb[23].mxu1 }
 0x148   :  { %v1004_v44 = vpack.c.bf16 %v425_v36, %v423_v32  ;;  %v1005_v45 = vpack.c.bf16 %v558_v37, %v556_v33  ;;  %v429_v46 = vadd.f32 %v428_v42, %v1244_v52  ;;  %v562_v47 = vadd.f32 %v561_v43, %v1246_v53 }
 0x14a   :  { %864 = vst [vmem:[#allocation7 + $0xa0] sm:$0xff] %v1004_v44  ;;  %865 = vst [vmem:[#allocation7 + $0xa8] sm:$0xff] %v1005_v45  ;;  %v1006_v48 = vpack.c.bf16 %v429_v46, %v427_v40  ;;  %v1007_v49 = vpack.c.bf16 %v562_v47, %v560_v41 }
 0x14c   :  { %866 = vst [vmem:[#allocation7 + $0xb0] sm:$0xff] %v1006_v48  ;;  %867 = vst [vmem:[#allocation7 + $0xb8] sm:$0xff] %v1007_v49  ;;  %v432_v54 = vpop.f32.mrb[24].mxu0  ;;  %v565_v55 = vpop.f32.mrb[24].mxu1 }
 0x14d   :  { %v433_v56 = vadd.f32 %v432_v54, %v1240_v50  ;;  %v566_v57 = vadd.f32 %v565_v55, %v1242_v51  ;;  %v434_v58 = vpop.f32.mrb[25].mxu0  ;;  %v567_v59 = vpop.f32.mrb[25].mxu1 }
 0x14e   :  { %v435_v60 = vadd.f32 %v434_v58, %v1244_v52  ;;  %v568_v61 = vadd.f32 %v567_v59, %v1246_v53  ;;  %v436_v62 = vpop.f32.mrb[26].mxu0  ;;  %v569_v63 = vpop.f32.mrb[26].mxu1 }
 0x14f   :  { %v437_v0 = vadd.f32 %v436_v62, %v1240_v50  ;;  %v570_v1 = vadd.f32 %v569_v63, %v1242_v51  ;;  %v438_v2 = vpop.f32.mrb[27].mxu0  ;;  %v571_v3 = vpop.f32.mrb[27].mxu1 }
 0x150   :  { %v1008_v4 = vpack.c.bf16 %v435_v60, %v433_v56  ;;  %v1009_v5 = vpack.c.bf16 %v568_v61, %v566_v57  ;;  %v439_v6 = vadd.f32 %v438_v2, %v1244_v52  ;;  %v572_v7 = vadd.f32 %v571_v3, %v1246_v53 }
 0x152   :  { %868 = vst [vmem:[#allocation7 + $0xc0] sm:$0xff] %v1008_v4  ;;  %869 = vst [vmem:[#allocation7 + $0xc8] sm:$0xff] %v1009_v5  ;;  %v1010_v8 = vpack.c.bf16 %v439_v6, %v437_v0  ;;  %v1011_v9 = vpack.c.bf16 %v572_v7, %v570_v1 }
 0x154   :  { %870 = vst [vmem:[#allocation7 + $0xd0] sm:$0xff] %v1010_v8  ;;  %871 = vst [vmem:[#allocation7 + $0xd8] sm:$0xff] %v1011_v9  ;;  %v442_v10 = vpop.f32.mrb[28].mxu0  ;;  %v575_v11 = vpop.f32.mrb[28].mxu1 }
 0x155   :  { %v443_v12 = vadd.f32 %v442_v10, %v1240_v50  ;;  %v576_v13 = vadd.f32 %v575_v11, %v1242_v51  ;;  %v444_v14 = vpop.f32.mrb[29].mxu0  ;;  %v577_v15 = vpop.f32.mrb[29].mxu1 }
 0x156   :  { %v445_v16 = vadd.f32 %v444_v14, %v1244_v52  ;;  %v578_v17 = vadd.f32 %v577_v15, %v1246_v53  ;;  %v446_v18 = vpop.f32.mrb[30].mxu0  ;;  %v579_v19 = vpop.f32.mrb[30].mxu1 }
 0x157   :  { %v447_v20 = vadd.f32 %v446_v18, %v1240_v50  ;;  %v580_v21 = vadd.f32 %v579_v19, %v1242_v51  ;;  %v448_v22 = vpop.f32.mrb[31].mxu0  ;;  %v581_v23 = vpop.f32.mrb[31].mxu1 }
 0x158   :  { %v1012_v24 = vpack.c.bf16 %v445_v16, %v443_v12  ;;  %v1013_v25 = vpack.c.bf16 %v578_v17, %v576_v13  ;;  %v449_v26 = vadd.f32 %v448_v22, %v1244_v52  ;;  %v582_v27 = vadd.f32 %v581_v23, %v1246_v53 }
 0x15a   :  { %872 = vst [vmem:[#allocation7 + $0xe0] sm:$0xff] %v1012_v24  ;;  %873 = vst [vmem:[#allocation7 + $0xe8] sm:$0xff] %v1013_v25  ;;  %v1014_v28 = vpack.c.bf16 %v449_v26, %v447_v20  ;;  %v1015_v29 = vpack.c.bf16 %v582_v27, %v580_v21 }
 0x15c   :  { %874 = vst [vmem:[#allocation7 + $0xf0] sm:$0xff] %v1014_v28  ;;  %875 = vst [vmem:[#allocation7 + $0xf8] sm:$0xff] %v1015_v29  ;;  %v452_v30 = vpop.f32.mrb[32].mxu0  ;;  %v585_v31 = vpop.f32.mrb[32].mxu1 }
 0x15d   :  { %v453_v32 = vadd.f32 %v452_v30, %v1240_v50  ;;  %v586_v33 = vadd.f32 %v585_v31, %v1242_v51  ;;  %v454_v34 = vpop.f32.mrb[33].mxu0  ;;  %v587_v35 = vpop.f32.mrb[33].mxu1 }
 0x15e   :  { %v455_v36 = vadd.f32 %v454_v34, %v1244_v52  ;;  %v588_v37 = vadd.f32 %v587_v35, %v1246_v53  ;;  %v456_v38 = vpop.f32.mrb[34].mxu0  ;;  %v589_v39 = vpop.f32.mrb[34].mxu1 }
 0x15f   :  { %v457_v40 = vadd.f32 %v456_v38, %v1240_v50  ;;  %v590_v41 = vadd.f32 %v589_v39, %v1242_v51  ;;  %v458_v42 = vpop.f32.mrb[35].mxu0  ;;  %v591_v43 = vpop.f32.mrb[35].mxu1 }
 0x160   :  { %v1016_v44 = vpack.c.bf16 %v455_v36, %v453_v32  ;;  %v1017_v45 = vpack.c.bf16 %v588_v37, %v586_v33  ;;  %v459_v46 = vadd.f32 %v458_v42, %v1244_v52  ;;  %v592_v47 = vadd.f32 %v591_v43, %v1246_v53 }
 0x162   :  { %876 = vst [vmem:[#allocation7 + $0x100] sm:$0xff] %v1016_v44  ;;  %877 = vst [vmem:[#allocation7 + $0x108] sm:$0xff] %v1017_v45  ;;  %v1018_v48 = vpack.c.bf16 %v459_v46, %v457_v40  ;;  %v1019_v49 = vpack.c.bf16 %v592_v47, %v590_v41 }
 0x164   :  { %878 = vst [vmem:[#allocation7 + $0x110] sm:$0xff] %v1018_v48  ;;  %879 = vst [vmem:[#allocation7 + $0x118] sm:$0xff] %v1019_v49  ;;  %v462_v54 = vpop.f32.mrb[36].mxu0  ;;  %v595_v55 = vpop.f32.mrb[36].mxu1 }
 0x165   :  { %v463_v56 = vadd.f32 %v462_v54, %v1240_v50  ;;  %v596_v57 = vadd.f32 %v595_v55, %v1242_v51  ;;  %v464_v58 = vpop.f32.mrb[37].mxu0  ;;  %v597_v59 = vpop.f32.mrb[37].mxu1 }
 0x166   :  { %v465_v60 = vadd.f32 %v464_v58, %v1244_v52  ;;  %v598_v61 = vadd.f32 %v597_v59, %v1246_v53  ;;  %v466_v62 = vpop.f32.mrb[38].mxu0  ;;  %v599_v63 = vpop.f32.mrb[38].mxu1 }
 0x167   :  { %v467_v0 = vadd.f32 %v466_v62, %v1240_v50  ;;  %v600_v1 = vadd.f32 %v599_v63, %v1242_v51  ;;  %v468_v2 = vpop.f32.mrb[39].mxu0  ;;  %v601_v3 = vpop.f32.mrb[39].mxu1 }
 0x168   :  { %v1020_v4 = vpack.c.bf16 %v465_v60, %v463_v56  ;;  %v1021_v5 = vpack.c.bf16 %v598_v61, %v596_v57  ;;  %v469_v6 = vadd.f32 %v468_v2, %v1244_v52  ;;  %v602_v7 = vadd.f32 %v601_v3, %v1246_v53 }
 0x16a   :  { %880 = vst [vmem:[#allocation7 + $0x120] sm:$0xff] %v1020_v4  ;;  %881 = vst [vmem:[#allocation7 + $0x128] sm:$0xff] %v1021_v5  ;;  %v1022_v8 = vpack.c.bf16 %v469_v6, %v467_v0  ;;  %v1023_v9 = vpack.c.bf16 %v602_v7, %v600_v1 }
 0x16c   :  { %882 = vst [vmem:[#allocation7 + $0x130] sm:$0xff] %v1022_v8  ;;  %883 = vst [vmem:[#allocation7 + $0x138] sm:$0xff] %v1023_v9 }
 0x16d   :  { %1145 = shalt.err (!%p1142_p6)
}
 0x16e   :  { %s1146_s17 = scalar_lea.hbm %s1346_s3, 5120 }
 0x16f   :  { %p1147_p7 = scmp.ne.s32.totalorder %s1346_s3, %s1146_s17  ;;  %p1150_p8 = scmp.lt.u32.totalorder %s1146_s17, %s1346_s3 }
 0x171   :  { %p1152_p9 = pnand %p1150_p8, %p1147_p7 }
 0x173   :  { %1155 = shalt.err (!%p1152_p9)
}
 0x174   :  { %895 = dma.vmem_to_hbm [thread:$0]  %s890_s13, 5120, %s1346_s3, [#allocation4], %s1166_s0, %s1166_s0, %s1167_s9  }
 0x175   :  { %1160 = dma.done.wait [#allocation4], 5120  }
 0x176   :  { %1161 = vsyncadd [#allocation4], 4294962176 }
 0x177   :  { %899 = vsyncpa [#allocation3], 1 }
 0x178   :  { %900 = vsyncpa [#allocation6], 1 }
 0x179   :  { %901 = vsyncpa [#allocation4], 1 }

</bundles_post_ra>
